<compile_context>
chip_gen: v7x
topology: tpu7x:2x2x1
jax: 0.10.0
libtpu: 0.0.40
codegen_flags: <defaults>
</compile_context>

<pallas_src>
import functools
import numpy as np
import jax
import jax.numpy as jnp
from jax.experimental import pallas as pl
from jax.experimental.pallas import tpu as pltpu


# --------------------------------------------------------------------------- #
# Rotary — the PyTorch module takes `rotary` as an injected dependency; we
# define a deterministic rotate-half RoPE (theta=10000) here.
# --------------------------------------------------------------------------- #
class Rotary:
    def __init__(self, head_dim: int, theta: float = 10000.0):
        self.head_dim = head_dim
        self.theta = theta

    def __call__(self, ctx: int) -> jnp.ndarray:
        half = self.head_dim // 2
        inv = 1.0 / (self.theta ** (jnp.arange(half, dtype=jnp.float32) / half))
        pos = jnp.arange(ctx, dtype=jnp.float32)
        freqs = pos[:, None] * inv[None, :]                  # (ctx, half)
        return jnp.concatenate([freqs, freqs], axis=-1)      # (ctx, head_dim)

    def apply_rotary(self, x: jnp.ndarray, freqs: jnp.ndarray) -> jnp.ndarray:
        cos, sin = jnp.cos(freqs), jnp.sin(freqs)
        d = x.shape[-1]
        x1, x2 = x[..., : d // 2], x[..., d // 2:]
        return x * cos + jnp.concatenate([-x2, x1], axis=-1) * sin


# --------------------------------------------------------------------------- #
# Tiled linear (y = x @ W^T + b) — bf16 MXU inputs, f32 accumulation.
# --------------------------------------------------------------------------- #
_SUBLANE_TILES = (512, 256, 128, 64, 32, 16, 8)
_LANE_TILES = (1024, 512, 256, 128)


def _pick_tile(dim, target, candidates):
    for c in candidates:
        if c <= target and dim % c == 0:
            return c
    return dim  # full dimension is always a legal block


def _linear_kernel(x_ref, wt_ref, b_ref, o_ref, acc_ref):
    @pl.when(pl.program_id(2) == 0)
    def _():
        acc_ref[...] = jnp.zeros_like(acc_ref)

    acc_ref[...] += jnp.dot(x_ref[...], wt_ref[...],
                            preferred_element_type=jnp.float32)

    @pl.when(pl.program_id(2) == pl.num_programs(2) - 1)
    def _():
        o_ref[...] = (acc_ref[...] + b_ref[...]).astype(o_ref.dtype)


def linear(x2d, wt, b2d, *, tm=512, tn=512, tk=512, out_dtype=jnp.float32,
           vmem_limit=64 * 1024 * 1024):
    """Tiled y = x @ W^T + b: (M,K) @ (K,N) + (1,N)."""
    M, K = x2d.shape
    K2, N = wt.shape
    assert K == K2
    tm = _pick_tile(M, tm, _SUBLANE_TILES)
    tn = _pick_tile(N, tn, _LANE_TILES)
    tk = _pick_tile(K, tk, _LANE_TILES)
    grid = (M // tm, N // tn, K // tk)
    return pl.pallas_call(
        _linear_kernel,
        out_shape=jax.ShapeDtypeStruct((M, N), out_dtype),
        grid_spec=pltpu.PrefetchScalarGridSpec(
            num_scalar_prefetch=0,
            grid=grid,
            in_specs=[
                pl.BlockSpec((tm, tk), lambda i, j, kk: (i, kk)),
                pl.BlockSpec((tk, tn), lambda i, j, kk: (kk, j)),
                pl.BlockSpec((1, tn), lambda i, j, kk: (0, j)),
            ],
            out_specs=pl.BlockSpec((tm, tn), lambda i, j, kk: (i, j)),
            scratch_shapes=[pltpu.VMEM((tm, tn), jnp.float32)],
        ),
        compiler_params=pltpu.CompilerParams(
            dimension_semantics=("parallel", "parallel", "arbitrary"),
            vmem_limit_bytes=vmem_limit,
        ),
    )(x2d, wt, b2d)


# --------------------------------------------------------------------------- #
# Attention kernel — one program per (batch, head-group, query-tile).
# Inputs are token-major (rows, lane_width) bf16 tiles taken straight from the
# flat (B, ctx, 3*dims) QKV view; per-head features are static lane slices.
# --------------------------------------------------------------------------- #
def _attention_kernel(q_ref, k_ref, v_ref, cq_ref, sq_ref, ck_ref, sk_ref,
                      zf_ref, wv_ref, qk_ref, *, hblk, head_dim,
                      q_off, k_off, v_off, use_roll):
    half = head_dim // 2
    q_block = q_ref.shape[0]
    ctx = k_ref.shape[0]
    qi = pl.program_id(2)

    cq = cq_ref[...]              # (tq, hd)  cos, qk scale folded in
    sq = sq_ref[...]              # (tq, hd)  sin, rotate-half sign + scale folded
    ck = ck_ref[...]              # (ctx, hd)
    sk = sk_ref[...]
    zf = zf_ref[0]                # scalar: clamp(softplus(factor))

    # causal mask as a select on int32 iotas (no f32 mask tensor)
    row = qi * q_block + jax.lax.broadcasted_iota(jnp.int32, (q_block, ctx), 0)
    col = jax.lax.broadcasted_iota(jnp.int32, (q_block, ctx), 1)
    causal = col <= row

    def rot_half(x):
        # concat([x2, x1]); the sign of the first half lives in the sin table
        if use_roll:
            return pltpu.roll(x, shift=half, axis=-1)   # XLU slot, free under MXU
        return jnp.concatenate([x[..., half:], x[..., :half]], axis=-1)

    q_all = q_ref[...]            # (tq, Wq)  bf16
    k_all = k_ref[...]            # (ctx, Wk) bf16
    v_all = v_ref[...]            # (ctx, Wv) bf16

    outs = []
    for h in range(hblk):         # static (unrolled) per-head loop
        q_sl = slice(q_off + h * head_dim, q_off + (h + 1) * head_dim)
        k_sl = slice(k_off + h * head_dim, k_off + (h + 1) * head_dim)
        v_sl = slice(v_off + h * head_dim, v_off + (h + 1) * head_dim)

        qh = q_all[:, q_sl].astype(jnp.float32)              # (tq, hd)
        kh = k_all[:, k_sl].astype(jnp.float32)              # (ctx, hd)

        qh = qh * cq + rot_half(qh) * sq                     # RoPE * scale
        kh = kh * ck + rot_half(kh) * sk
        # zero-token down-weighting folded into the key rows (scale > 0 keeps
        # exact zeros at zero, so the test is equivalent to the reference)
        kh = kh * jnp.where(kh[:, 0:1] == 0.0, zf, 1.0)

        s = jax.lax.dot_general(                             # (tq, ctx) f32
            qh.astype(jnp.bfloat16), kh.astype(jnp.bfloat16),
            (((1,), (1,)), ((), ())),
            preferred_element_type=jnp.float32)
        s = jnp.where(causal, s, 0.0)                        # multiplicative mask
        qk_ref[h] = s.astype(qk_ref.dtype)

        # softmax: max-subtracted, EUP approx reciprocal for the divide
        m = jnp.max(s, axis=-1, keepdims=True)
        e = jnp.exp(s - m)
        w = e * pl.reciprocal(jnp.sum(e, axis=-1, keepdims=True), approx=True)

        o = jnp.dot(w.astype(jnp.bfloat16), v_all[:, v_sl],
                    preferred_element_type=jnp.float32)      # (tq, hd)
        outs.append(o.astype(wv_ref.dtype))

    # single lane-dense store of the whole (tq, hblk*hd) tile
    wv_ref[...] = jnp.concatenate(outs, axis=-1) if hblk > 1 else outs[0]


# --------------------------------------------------------------------------- #
# Generation-aware tile / VMEM sizing
# --------------------------------------------------------------------------- #
def _vmem_capacity_bytes():
    try:
        return int(pltpu.get_tpu_info().vmem_capacity_bytes)
    except Exception:
        return 64 * 1024 * 1024   # conservative (v7x-sized) fallback


def _attention_tiles(batch, heads, ctx, head_dim, dims, vmem_limit,
                     max_q_block=256):
    """Pick (head_group, query_block, fused_mode) under a VMEM budget.

    BlockSpec legality: the head-group lane width (hblk*head_dim) must be a
    multiple of 128 (split path) or cover the full 3*dims row (fused fallback
    for tiny / unaligned head_dim); the query block must be a multiple of 8 or
    the full ctx.
    """
    hblks = [h for h in range(heads, 0, -1)
             if heads % h == 0 and (h * head_dim) % 128 == 0]
    fused = not hblks
    if fused:
        hblks = [heads]
        tqs = [ctx]
    else:
        tqs = [t for t in range(min(max_q_block, ctx), 7, -8) if ctx % t == 0]
        if ctx not in tqs and (ctx <= max_q_block or not tqs):
            tqs = [ctx] + tqs

    budget = max(int(vmem_limit * 0.5), 2 * 1024 * 1024)

    def fits(hb, tq):
        lane_w = 3 * dims if fused else hb * head_dim
        in_b = 4 * (tq * lane_w + 2 * ctx * lane_w)               # bf16 q,k,v, 2 buffers
        out_b = 2 * (hb * tq * ctx * 4 + tq * hb * head_dim * 2)  # qk f32 + wv bf16, 2 buffers
        tmp_b = 4 * tq * ctx * 4 + 4 * ctx * head_dim * 4         # live per-head temporaries
        return in_b + out_b + tmp_b <= budget

    hblk, q_block = hblks[-1], min(tqs)
    for tq in tqs:                      # prefer large query tiles ...
        chosen = False
        for hb in hblks:                # ... then large head groups
            if fits(hb, tq):
                hblk, q_block, chosen = hb, tq, True
                break
        if chosen:
            break

    # give megacore (v7x: 2 TCs) at least two parallel grid steps when possible
    if not fused and batch * (heads // hblk) * (ctx // q_block) < 2:
        if q_block % 16 == 0:
            q_block //= 2
        elif len(hblks) > 1 and hblk == hblks[0]:
            hblk = hblks[1]
    return hblk, q_block, fused


# --------------------------------------------------------------------------- #
# Module wrapper
# --------------------------------------------------------------------------- #
class MultiheadBPallas:
    def __init__(self, dims, head, rotary, key, qk_dtype=jnp.float32):
        assert dims % head == 0 and (dims // head) % 2 == 0
        self.dims = dims
        self.head = head
        self.head_dim = dims // head
        self.rotary = rotary
        self.qk_dtype = qk_dtype
        ks = jax.random.split(key, 7)
        s = 1.0 / np.sqrt(dims)
        u = lambda k, shp: jax.random.uniform(k, shp, jnp.float32, -s, s)
        # f32 master weights (also used by the pure-JAX reference)
        self.wq, self.bq = u(ks[0], (dims, dims)), u(ks[1], (dims,))
        self.wk = u(ks[2], (dims, dims))                        # no bias
        self.wv, self.bv = u(ks[3], (dims, dims)), u(ks[4], (dims,))
        self.wo, self.bo = u(ks[5], (dims, dims)), u(ks[6], (dims,))
        self.factor = jnp.float32(0.001)

        # Hoisted, kernel-ready weights: fused QKV W^T (dims, 3*dims) bf16,
        # fused bias (k has none -> zeros), output projection W^T bf16.
        self.wqkv_t = jnp.concatenate(
            [self.wq.T, self.wk.T, self.wv.T], axis=1).astype(jnp.bfloat16)
        self.bqkv = jnp.concatenate(
            [self.bq, jnp.zeros((dims,), jnp.float32), self.bv]
        ).reshape(1, 3 * dims)
        self.wo_t = self.wo.T.astype(jnp.bfloat16)
        self.bo2d = self.bo.reshape(1, dims)

        cap = _vmem_capacity_bytes()
        # raise the scoped-VMEM limit above the 32 MiB default on 128 MiB parts,
        # stay well inside v7x's 64 MiB
        self._vmem_limit = min(int(cap * 3 // 4), 100 * 1024 * 1024)
        self._rope_cache = {}

    def _rope_tables(self, ctx):
        # full-width cos / sign-folded sin tables with the qk scale folded in
        if ctx not in self._rope_cache:
            hd = self.head_dim
            half = hd // 2
            scale = float(hd) ** -0.25
            f = self.rotary(ctx)[:, :half]                     # (ctx, half)
            cos_full = jnp.concatenate([jnp.cos(f), jnp.cos(f)], axis=-1) * scale
            sin_sgn = jnp.concatenate([-jnp.sin(f), jnp.sin(f)], axis=-1) * scale
            self._rope_cache[ctx] = (cos_full.astype(jnp.float32),
                                     sin_sgn.astype(jnp.float32))
        return self._rope_cache[ctx]

    def __call__(self, x):
        B, ctx, dims = x.shape
        H, hd = self.head, self.head_dim
        assert dims == self.dims

        # ---- fused QKV projection: one tiled matmul, bf16 output ------------
        x2d = x.reshape(B * ctx, dims).astype(jnp.bfloat16)
        qkv = linear(x2d, self.wqkv_t, self.bqkv, out_dtype=jnp.bfloat16,
                     vmem_limit=self._vmem_limit)              # (B*ctx, 3*dims)
        qkv3 = qkv.reshape(B, ctx, 3 * dims)                   # free view, no relayout

        cos_t, sin_t = self._rope_tables(ctx)                  # (ctx, hd) f32
        zf = jnp.clip(jax.nn.softplus(self.factor), 1e-5, 0.1)
        zf = zf.reshape(1).astype(jnp.float32)

        hblk, q_block, fused = _attention_tiles(
            B, H, ctx, hd, dims, self._vmem_limit)
        lane_w = 3 * dims if fused else hblk * hd
        npb = H // hblk                    # head-group blocks per q/k/v tensor
        nq = ctx // q_block

        if fused:
            # tiny / unaligned head_dim: take the whole (ctx, 3*dims) row block
            # and pick q/k/v via static lane offsets inside the kernel
            q_idx = lambda b, hg, qi: (b, 0, 0)
            k_idx = lambda b, hg, qi: (b, 0, 0)
            v_idx = lambda b, hg, qi: (b, 0, 0)
            offs = (0, dims, 2 * dims)
        else:
            q_idx = lambda b, hg, qi: (b, qi, hg)
            k_idx = lambda b, hg, qi: (b, 0, npb + hg)
            v_idx = lambda b, hg, qi: (b, 0, 2 * npb + hg)
            offs = (0, 0, 0)

        kernel = functools.partial(
            _attention_kernel, hblk=hblk, head_dim=hd,
            q_off=offs[0], k_off=offs[1], v_off=offs[2],
            use_roll=(hd % 128 == 0))

        wv, qk = pl.pallas_call(
            kernel,
            grid=(B, npb, nq),
            in_specs=[
                pl.BlockSpec((None, q_block, lane_w), q_idx),
                pl.BlockSpec((None, ctx, lane_w), k_idx),
                pl.BlockSpec((None, ctx, lane_w), v_idx),
                pl.BlockSpec((q_block, hd), lambda b, hg, qi: (qi, 0)),
                pl.BlockSpec((q_block, hd), lambda b, hg, qi: (qi, 0)),
                pl.BlockSpec((ctx, hd), lambda b, hg, qi: (0, 0)),
                pl.BlockSpec((ctx, hd), lambda b, hg, qi: (0, 0)),
                pl.BlockSpec(memory_space=pltpu.MemorySpace.SMEM),
            ],
            out_specs=[
                pl.BlockSpec((None, q_block, hblk * hd),
                             lambda b, hg, qi: (b, qi, hg)),
                pl.BlockSpec((None, hblk, q_block, ctx),
                             lambda b, hg, qi: (b, hg, qi, 0)),
            ],
            out_shape=[
                jax.ShapeDtypeStruct((B, ctx, dims), jnp.bfloat16),   # wv, lane-dense
                jax.ShapeDtypeStruct((B, H, ctx, ctx), self.qk_dtype),
            ],
            compiler_params=pltpu.CompilerParams(
                dimension_semantics=("parallel", "parallel", "parallel"),
                vmem_limit_bytes=self._vmem_limit,
            ),
        )(qkv3, qkv3, qkv3, cos_t, sin_t, cos_t, sin_t, zf)

        # ---- output projection (consumes the free (B*ctx, dims) view) -------
        out = linear(wv.reshape(B * ctx, dims), self.wo_t, self.bo2d,
                     out_dtype=jnp.float32,
                     vmem_limit=self._vmem_limit).reshape(B, ctx, dims)
        return out, qk


# --------------------------------------------------------------------------- #
# Pure-JAX reference (mirrors the PyTorch forward) for correctness checking
# --------------------------------------------------------------------------- #
def reference_forward(m: MultiheadBPallas, x, rotary, head):
    B, ctx, dims = x.shape
    hd = dims // head
    lin = lambda a, w, b: (a @ w.T) if b is None else (a @ w.T + b)
    q, k, v = lin(x, m.wq, m.bq), lin(x, m.wk, None), lin(x, m.wv, m.bv)
    scale = hd ** -0.25
    qh = q.reshape(B, ctx, head, hd).transpose(0, 2, 1, 3)
    kh = k.reshape(B, ctx, head, hd).transpose(0, 2, 1, 3)
    vh = v.reshape(B, ctx, head, hd).transpose(0, 2, 1, 3)
    freqs = rotary(ctx)
    qh = rotary.apply_rotary(qh, freqs)
    kh = rotary.apply_rotary(kh, freqs)
    qk = (qh * scale) @ jnp.swapaxes(kh * scale, -1, -2)
    mask = jnp.triu(jnp.ones((ctx, ctx)), k=1)
    scaled_mask = jnp.where(mask == 1, 0.0, 1.0)
    token_ids = kh[:, :, :, 0]
    zf = jnp.clip(jax.nn.softplus(m.factor), 1e-5, 0.1)
    scaled_zero = jnp.where(token_ids == 0.0, zf, 1.0)
    scaling = scaled_mask[None, None] * scaled_zero[:, :, None, :]
    qk = (qk * scaling).astype(jnp.float32)
    w = jax.nn.softmax(qk, axis=-1)
    wv = (w @ vh).transpose(0, 2, 1, 3).reshape(B, ctx, dims)
    return lin(wv, m.wo, m.bo), qk


if __name__ == "__main__":
    def run_case(batch, ctx, dims, head):
        key = jax.random.PRNGKey(0)
        k_param, k_x = jax.random.split(key)
        rotary = Rotary(dims // head)
        mha = MultiheadBPallas(dims, head, rotary, k_param)
        x = jax.random.normal(k_x, (batch, ctx, dims), jnp.float32)
        out, qk = mha(x)
        out = jax.block_until_ready(out)
        qk = jax.block_until_ready(qk)
        ref_out, ref_qk = reference_forward(mha, x, rotary, head)
        # bf16 MXU operands + approx reciprocal -> ~1-2% expected deviation
        np.testing.assert_allclose(np.asarray(out), np.asarray(ref_out),
                                   rtol=3e-2, atol=3e-2)
        np.testing.assert_allclose(np.asarray(qk), np.asarray(ref_qk),
                                   rtol=3e-2, atol=3e-2)

    # tiny shapes (exercise the fused fallback path for unaligned head_dim)
    run_case(batch=2, ctx=8, dims=32, head=4)
    # lane-aligned shapes (exercise the split head-group + query-tiling path)
    run_case(batch=2, ctx=512, dims=256, head=4)
    print("KERNEL_OK")
</pallas_src>

<mosaic_0001>
module attributes {stable_mosaic.version = 11 : i64} {
  func.func @_linear_kernel(%arg0: i32, %arg1: i32, %arg2: i32, %arg3: memref<16x32xbf16, #tpu.memory_space<vmem>>, %arg4: memref<32x96xbf16, #tpu.memory_space<vmem>>, %arg5: memref<1x96xf32, #tpu.memory_space<vmem>>, %arg6: memref<16x96xbf16, #tpu.memory_space<vmem>>, %arg7: memref<16x96xf32, #tpu.memory_space<vmem>>) attributes {dimension_semantics = [#tpu.dimension_semantics<parallel>, #tpu.dimension_semantics<parallel>, #tpu.dimension_semantics<arbitrary>], iteration_bounds = array<i64: 1, 1, 1>, scalar_prefetch = 0 : i64, scratch_operands = 1 : i64, tpu.core_type = #tpu.core_type<tc>, window_params = [{transform_indices = @transform_0, window_bounds = array<i64: 16, 32>}, {transform_indices = @transform_1, window_bounds = array<i64: 32, 96>}, {transform_indices = @transform_2, window_bounds = array<i64: 1, 96>}, {transform_indices = @transform_3, window_bounds = array<i64: 16, 96>}]} {
    %c0_i32 = arith.constant 0 : i32
    %0 = arith.cmpi eq, %arg2, %c0_i32 : i32
    %1 = arith.extui %0 : i1 to i32
    %c0_i32_0 = arith.constant 0 : i32
    %2 = arith.cmpi ne, %1, %c0_i32_0 : i32
    scf.if %2 {
      %cst_10 = arith.constant 0.000000e+00 : f32
      %12 = vector.broadcast %cst_10 : f32 to vector<16x96xf32>
      %c0_11 = arith.constant 0 : index
      %c0_12 = arith.constant 0 : index
      %13 = vector.load %arg7[%c0_11, %c0_12] : memref<16x96xf32, #tpu.memory_space<vmem>>, vector<16x96xf32>
      tpu.vector_store %arg7[%c0_11, %c0_12], %12 {strides = array<i32>} : memref<16x96xf32, #tpu.memory_space<vmem>>, vector<16x96xf32>,
    } else {
    }
    %c0 = arith.constant 0 : index
    %c0_1 = arith.constant 0 : index
    %3 = vector.load %arg7[%c0, %c0_1] : memref<16x96xf32, #tpu.memory_space<vmem>>, vector<16x96xf32>
    %c0_2 = arith.constant 0 : index
    %c0_3 = arith.constant 0 : index
    %4 = vector.load %arg3[%c0_2, %c0_3] : memref<16x32xbf16, #tpu.memory_space<vmem>>, vector<16x32xbf16>
    %c0_4 = arith.constant 0 : index
    %c0_5 = arith.constant 0 : index
    %5 = vector.load %arg4[%c0_4, %c0_5] : memref<32x96xbf16, #tpu.memory_space<vmem>>, vector<32x96xbf16>
    %cst = arith.constant dense<0.000000e+00> : vector<16x96xf32>
    %6 = tpu.matmul %4, %5, %cst {dimension_numbers = #tpu.dot_dimension_numbers<[1], [0], [0], [1], [0, 0, 1, 1], [], []>} : vector<16x32xbf16>, vector<32x96xbf16>, vector<16x96xf32> -> vector<16x96xf32>
    %7 = arith.addf %3, %6 : vector<16x96xf32>
    %c0_6 = arith.constant 0 : index
    %c0_7 = arith.constant 0 : index
    %8 = vector.load %arg7[%c0_6, %c0_7] : memref<16x96xf32, #tpu.memory_space<vmem>>, vector<16x96xf32>
    tpu.vector_store %arg7[%c0_6, %c0_7], %7 {strides = array<i32>} : memref<16x96xf32, #tpu.memory_space<vmem>>, vector<16x96xf32>,
    %c0_i32_8 = arith.constant 0 : i32
    %9 = arith.cmpi eq, %arg2, %c0_i32_8 : i32
    %10 = arith.extui %9 : i1 to i32
    %c0_i32_9 = arith.constant 0 : i32
    %11 = arith.cmpi ne, %10, %c0_i32_9 : i32
    scf.if %11 {
      %c0_10 = arith.constant 0 : index
      %c0_11 = arith.constant 0 : index
      %12 = vector.load %arg7[%c0_10, %c0_11] : memref<16x96xf32, #tpu.memory_space<vmem>>, vector<16x96xf32>
      %c0_12 = arith.constant 0 : index
      %c0_13 = arith.constant 0 : index
      %13 = vector.load %arg5[%c0_12, %c0_13] : memref<1x96xf32, #tpu.memory_space<vmem>>, vector<1x96xf32>
      %14 = vector.broadcast %13 : vector<1x96xf32> to vector<16x96xf32>
      %15 = arith.addf %12, %14 : vector<16x96xf32>
      %16 = arith.truncf %15 : vector<16x96xf32> to vector<16x96xbf16>
      %c0_14 = arith.constant 0 : index
      %c0_15 = arith.constant 0 : index
      %17 = vector.load %arg6[%c0_14, %c0_15] : memref<16x96xbf16, #tpu.memory_space<vmem>>, vector<16x96xbf16>
      tpu.vector_store %arg6[%c0_14, %c0_15], %16 {strides = array<i32>} : memref<16x96xbf16, #tpu.memory_space<vmem>>, vector<16x96xbf16>,
    } else {
    }
    return
  }
  func.func @transform_0(%arg0: i32, %arg1: i32, %arg2: i32) -> (i32, i32) {
    %c0_i32 = arith.constant 0 : i32
    return %arg0, %arg2 : i32, i32
  }
  func.func @transform_1(%arg0: i32, %arg1: i32, %arg2: i32) -> (i32, i32) {
    %c0_i32 = arith.constant 0 : i32
    return %arg2, %arg1 : i32, i32
  }
  func.func @transform_2(%arg0: i32, %arg1: i32, %arg2: i32) -> (i32, i32) {
    %c0_i32 = arith.constant 0 : i32
    %c0_i32_0 = arith.constant 0 : i32
    return %c0_i32, %arg1 : i32, i32
  }
  func.func @transform_3(%arg0: i32, %arg1: i32, %arg2: i32) -> (i32, i32) {
    %c0_i32 = arith.constant 0 : i32
    return %arg0, %arg1 : i32, i32
  }
}

</mosaic_0001>

<bundles_post_ra>
// kernel: tpu_custom_call.1
= control target key start
LH: loop header
LB: loop body
LE: loop exit
PB: predicated region body
PF: predicated region fallthrough
CT: control target
= control target key end

     0   :  { %8 = vsyncpa [#allocation4], 0  ;;  %s350_s0 = inlined_call_operand.hbm [shape: bf16[16,32], index: 0, kind: input, shape index: {}]   ;;  %s351_s1 = inlined_call_operand.hbm [shape: bf16[32,96], index: 1, kind: input, shape index: {}]   ;;  %s352_s2 = inlined_call_operand.vmem [shape: f32[1,96], index: 2, kind: input, shape index: {}]   ;;  %s353_s3 = inlined_call_operand.hbm [shape: bf16[16,96], index: 3, kind: output, shape index: {}]  }
   0x1   :  { %9 = vsyncpa [#allocation7], 0 }
   0x2   :  { %10 = vsyncpa [#allocation5], 0  ;;  %s271_s12 = smov [#allocation3]   ;;  %s199_s16 = scalar_lea.hbm %s350_s0, 128 }
   0x3   :  { %s16_s13 = sshll.u32 %s271_s12, 4  ;;  %p200_p0 = scmp.ne.s32.totalorder %s350_s0, %s199_s16  ;;  %s17_s13 = int_to_ptr.vmem [resolvable:$true] %s16_s13 }
   0x4   :  { %p203_p1 = scmp.lt.u32.totalorder %s199_s16, %s350_s0 }
   0x6   :  { %p205_p2 = pnand %p203_p1, %p200_p0 }
   0x8   :  { %208 = shalt.err (!%p205_p2)
}
   0x9   :  { %s209_s21 = scalar_lea.vmem %s17_s13, 128  ;;  %p214_p4 = scmp.lt.s32.totalorder %s17_s13, %s17_s13 }
   0xa   :  { %p210_p3 = scmp.ne.s32.totalorder %s17_s13, %s209_s21  ;;  %p215_p5 = scmp.lt.s32.totalorder %s209_s21, %s209_s21 }
   0xc   :  { %p216_p6 = por %p215_p5, %p214_p4 }
   0xe   :  { %p217_p7 = pnand %p216_p6, %p210_p3 }
  0x10   :  { %220 = shalt.err (!%p217_p7)
}
  0x11   :  { %s272_s22 = smov 64   ;;  %s273_s23 = smov 4  }
  0x12   :  { %22 = dma.hbm_to_vmem [thread:$0]  %s350_s0, 128, %s17_s13, [#allocation4], %s272_s22, %s272_s22, %s273_s23  }
  0x13   :  { %s274_s26 = smov [#allocation6]   ;;  %s221_s30 = scalar_lea.hbm %s351_s1, 256 }
  0x14   :  { %s28_s27 = sshll.u32 %s274_s26, 4  ;;  %p222_p8 = scmp.ne.s32.totalorder %s351_s1, %s221_s30  ;;  %s29_s27 = int_to_ptr.vmem [resolvable:$true] %s28_s27 }
  0x15   :  { %p225_p9 = scmp.lt.u32.totalorder %s221_s30, %s351_s1 }
  0x17   :  { %p227_p10 = pnand %p225_p9, %p222_p8 }
  0x19   :  { %230 = shalt.err (!%p227_p10)
}
  0x1a   :  { %s231_s8 = scalar_lea.vmem %s29_s27, 256  ;;  %p236_p12 = scmp.lt.s32.totalorder %s29_s27, %s29_s27 }
  0x1b   :  { %p232_p11 = scmp.ne.s32.totalorder %s29_s27, %s231_s8  ;;  %p237_p13 = scmp.lt.s32.totalorder %s231_s8, %s231_s8 }
  0x1d   :  { %p238_p0 = por %p237_p13, %p236_p12 }
  0x1f   :  { %p239_p1 = pnand %p238_p0, %p232_p11 }
  0x21   :  { %242 = shalt.err (!%p239_p1)
}
  0x22   :  { %34 = dma.hbm_to_vmem [thread:$0]  %s351_s1, 256, %s29_s27, [#allocation7], %s272_s22, %s272_s22, %s273_s23  }
  0x23   :  { %265 = dma.done.wait [#allocation4], 128  }
  0x24   :  { %266 = vsyncadd [#allocation4], 4294967168 }
  0x25   :  { %267 = dma.done.wait [#allocation7], 256  }
  0x26   :  { %268 = vsyncadd [#allocation7], 4294967040  ;;  %vm48_vm0 = vcmask 785408   ;;  %v275_v0 = vmov 0.0   ;;  %vm276_vm1 = vmmov 0   ;;  %v196_v1 = vld [vmem:[#allocation6] sm:$0xff]  }
  0x27   :  { %49 = vst.msk [vmem:[#allocation2] sm:$0xff] %vm48_vm0, %v275_v0  ;;  %50 = vst.msk [vmem:[#allocation2 + $0x8] sm:$0xff] %vm48_vm0, %v275_v0  ;;  %181 = vmatprep.subr.bf16.mxu0 %v275_v0  ;;  %185 = vmatprep.mubr.msk.bf16.mxu0 %vm276_vm1, %v275_v0  ;;  %v197_v2 = vld [vmem:[#allocation6 + $0x8] sm:$0xff]   ;;  %v198_v3 = vld [vmem:[#allocation3] sm:$0xff]   ;;  %vm76_vm2 = vcmask 261120   ;;  %vm148_vm3 = vcmask 781312  }
  0x28   :  { %182 = vmatpush3.bf16.msra.mxu0 %v196_v1  ;;  %v173_v12 = vld [vmem:[%s352_s2] ss:$0 sm:$0xff]  ;;  %s277_s11 = smov [#allocation8]  }
  0x29   :  { %183 = vmatprep.subr.bf16.mxu0 %v275_v0  ;;  %s156_s12 = sshll.u32 %s277_s11, 4  ;;  %s157_s12 = int_to_ptr.vmem [resolvable:$true] %s156_s12 }
  0x2a   :  { %s243_s13 = scalar_lea.vmem %s157_s12, 128  ;;  %p248_p3 = scmp.lt.s32.totalorder %s157_s12, %s157_s12 }
  0x2b   :  { %p244_p2 = scmp.ne.s32.totalorder %s157_s12, %s243_s13  ;;  %p249_p4 = scmp.lt.s32.totalorder %s243_s13, %s243_s13 }
  0x2c   :  { %184 = vmatpush3.bf16.msra.mxu0 %v197_v2 }
  0x2d   :  { %p250_p5 = por %p249_p4, %p248_p3 }
  0x2e   :  { %v51_v4 = vld [vmem:[#allocation2] sm:$0xff]  ;;  %v52_v6 = vld [vmem:[#allocation2 + $0x8] sm:$0xff] }
  0x2f   :  { %186 = vmatmul.mubr.msk.bf16.vlgmr.msra.gmra.mrb[0].mxu0 %vm76_vm2, %v198_v3  ;;  %p251_p6 = pnand %p250_p5, %p244_p2 }
 0x102   :  { %v114_v5 = vpop.f32.mrb[0].mxu0 }
 0x103   :  { %v121_v7 = vadd.f32 %v114_v5, %v51_v4  ;;  %v187_v8 = vpop.f32.mrb[1].mxu0 }
 0x104   :  { %v117_v9 = vpop.f32.mrb[2].mxu0 }
 0x105   :  { %124 = vst.msk [vmem:[#allocation2] sm:$0xff] %vm48_vm0, %v121_v7  ;;  %v122_v10 = vadd.f32 %v117_v9, %v52_v6  ;;  %v188_v11 = vpop.f32.mrb[3].mxu0 }
 0x107   :  { %125 = vst.msk [vmem:[#allocation2 + $0x8] sm:$0xff] %vm48_vm0, %v122_v10 }
 0x10c   :  { %v129_v13 = vld [vmem:[#allocation2] sm:$0xff] }
 0x10d   :  { %v138_v14 = vadd.f32 %v173_v12, %v129_v13 }
 0x10e   :  { %v130_v15 = vld [vmem:[#allocation2 + $0x8] sm:$0xff] }
 0x10f   :  { %v139_v16 = vadd.f32 %v173_v12, %v130_v15  ;;  %v176_v17 = vpack.c.bf16 %v138_v14, %v138_v14 }
 0x111   :  { %v177_v18 = vpack.c.bf16 %v139_v16, %v139_v16  ;;  %149 = vst.msk [vmem:[#allocation8] sm:$0xf] %vm148_vm3, %v176_v17 }
 0x113   :  { %150 = vst.msk [vmem:[#allocation8 + $0x4] sm:$0xf] %vm148_vm3, %v177_v18 }
 0x114   :  { %254 = shalt.err (!%p251_p6)
}
 0x115   :  { %s255_s15 = scalar_lea.hbm %s353_s3, 128 }
 0x116   :  { %p256_p7 = scmp.ne.s32.totalorder %s353_s3, %s255_s15  ;;  %p259_p8 = scmp.lt.u32.totalorder %s255_s15, %s353_s3 }
 0x118   :  { %p261_p9 = pnand %p259_p8, %p256_p7 }
 0x11a   :  { %264 = shalt.err (!%p261_p9)
}
 0x11b   :  { %162 = dma.vmem_to_hbm [thread:$0]  %s157_s12, 128, %s353_s3, [#allocation5], %s272_s22, %s272_s22, %s273_s23  }
 0x11c   :  { %269 = dma.done.wait [#allocation5], 128  }
 0x11d   :  { %270 = vsyncadd [#allocation5], 4294967168 }
 0x11e   :  { %166 = vsyncpa [#allocation4], 1 }
 0x11f   :  { %167 = vsyncpa [#allocation7], 1 }
 0x120   :  { %168 = vsyncpa [#allocation5], 1 }

</bundles_post_ra>
